<compile_context>
chip_gen: v7x
topology: tpu7x:2x2x1
jax: 0.10.0
libtpu: 0.0.40
codegen_flags: <defaults>
</compile_context>

<pallas_src>
import math

import jax
import jax.numpy as jnp
from jax.experimental import pallas as pl
from jax.experimental.pallas import tpu as pltpu


_LANE = 128
# Sub-32-bit dtypes pack along sublanes: one packed "row group" is 32 bytes
# deep (8 sublanes x 4 bytes), so the sublane multiple is 32 / itemsize.
_SUBLANE_BYTES = 32


def _default_budgets():
    """Generation-aware (max_block_bytes, vmem_limit_bytes)."""
    try:
        info = pltpu.get_tpu_info()
        vmem_phys = getattr(info, "vmem_capacity_bytes", None) or (64 << 20)
    except Exception:  # pragma: no cover - conservative fallback off-TPU
        vmem_phys = 64 << 20
    # 128 MiB chips (v5e/v6e): 64 MiB scoped limit; 64 MiB chips (v7x): 32 MiB.
    vmem_limit = min(vmem_phys // 2, 64 << 20)
    # Double-buffered in + out = 4 live block buffers; leave 2x headroom for
    # compiler-internal scratch.
    max_block = vmem_limit // 8
    return max_block, vmem_limit


# ----------------------------------------------------------------------------
# Direct HBM -> HBM DMA copy (default materializing path).
# ----------------------------------------------------------------------------
def dma_copy(*xs):
    """Fused identity copy of one or more arrays via direct HBM->HBM DMA.

    All arrays are copied inside a single pallas_call: each input/output pair
    gets its own DMA (and DMA semaphore); no VMEM staging, no tiling.
    Returns a tuple of copies (same order as inputs).
    """
    n = len(xs)
    total_bytes = sum(
        math.prod(x.shape) * jnp.dtype(x.dtype).itemsize for x in xs)

    def kernel(*refs):
        in_refs = refs[:n]
        out_refs = refs[n:2 * n]
        sem = refs[2 * n]
        copies = [
            pltpu.make_async_copy(in_refs[i], out_refs[i], sem.at[i])
            for i in range(n)
        ]
        for c in copies:
            c.start()
        for c in copies:
            c.wait()

    outs = pl.pallas_call(
        kernel,
        out_shape=tuple(jax.ShapeDtypeStruct(x.shape, x.dtype) for x in xs),
        in_specs=[pl.BlockSpec(memory_space=pl.ANY)] * n,
        out_specs=tuple(pl.BlockSpec(memory_space=pl.ANY) for _ in range(n)),
        scratch_shapes=[pltpu.SemaphoreType.DMA((n,))],
        cost_estimate=pl.CostEstimate(
            flops=0, transcendentals=0, bytes_accessed=2 * total_bytes),
    )(*xs)
    return tuple(outs)


# ----------------------------------------------------------------------------
# Tiled, VMEM-staged lane-dense copy (explicit alternative path).
# ----------------------------------------------------------------------------
def _copy_kernel(x_ref, o_ref):
    o_ref[...] = x_ref[...]


def passthrough_copy(x: jax.Array, *, max_block_bytes=None,
                     vmem_limit_bytes=None) -> jax.Array:
    """Materializing identity copy of a tensor via a tiled Pallas TPU kernel.

    Lane-aligned arrays are viewed as [rows, cols] (leading dims collapsed --
    a free, layout-preserving metadata reshape since the last dim is kept) and
    tiled with large lane-dense blocks; very wide rows additionally tile the
    lane dimension so blocks never exceed the VMEM budget.  Non-lane-aligned
    shapes route to the direct HBM->HBM DMA copy instead of a layout-changing
    reshape.
    """
    orig_shape = x.shape
    dtype = x.dtype
    itemsize = jnp.dtype(dtype).itemsize
    total = math.prod(orig_shape) if orig_shape else 1
    size_bytes = total * itemsize
    last = orig_shape[-1] if orig_shape else 1

    d_block, d_vmem = _default_budgets()
    if max_block_bytes is None:
        max_block_bytes = d_block
    if vmem_limit_bytes is None:
        vmem_limit_bytes = d_vmem

    if total == 0 or last % _LANE != 0:
        # Irregular / non-lane-aligned: direct DMA (no relayout, no VMEM cap).
        return dma_copy(x)[0]

    rows, cols = total // last, last
    x2d = x.reshape(rows, cols)  # collapse leading dims: layout-preserving

    # Sublane multiple per dtype: f32 -> 8, bf16 -> 16, int8 -> 32.
    sublane_mult = max(8, _SUBLANE_BYTES // itemsize)
    cost = pl.CostEstimate(
        flops=0, transcendentals=0, bytes_accessed=2 * size_bytes)

    if cols * itemsize * sublane_mult > max_block_bytes:
        # Very wide rows: tile the lane dimension too (2D grid) so blocks stay
        # under the VMEM budget on every generation.
        block_rows = min(rows, sublane_mult)
        block_cols = max(
            _LANE,
            (max_block_bytes // (block_rows * itemsize)) // _LANE * _LANE)
        block_cols = min(block_cols, cols)
        grid = (pl.cdiv(rows, block_rows), pl.cdiv(cols, block_cols))
        in_specs = [pl.BlockSpec((block_rows, block_cols), lambda i, j: (i, j))]
        out_specs = pl.BlockSpec((block_rows, block_cols), lambda i, j: (i, j))
        dims = ("parallel", "parallel")
    else:
        row_bytes = cols * itemsize
        block_rows = max(sublane_mult,
                         (max_block_bytes // row_bytes) // sublane_mult
                         * sublane_mult)
        if block_rows >= rows:
            if rows >= 2 * sublane_mult:
                # Ensure >=2 grid steps so "parallel" can shard across the two
                # TensorCores on v7x (harmless elsewhere: one extra ~0.35us).
                half = -(-rows // 2)
                block_rows = -(-half // sublane_mult) * sublane_mult
            else:
                block_rows = rows  # full dim: always a legal block shape
        grid = (pl.cdiv(rows, block_rows),)
        in_specs = [pl.BlockSpec((block_rows, cols), lambda i: (i, 0))]
        out_specs = pl.BlockSpec((block_rows, cols), lambda i: (i, 0))
        dims = ("parallel",)

    out2d = pl.pallas_call(
        _copy_kernel,
        out_shape=jax.ShapeDtypeStruct((rows, cols), dtype),
        grid=grid,
        in_specs=in_specs,
        out_specs=out_specs,
        compiler_params=pltpu.CompilerParams(
            dimension_semantics=dims,
            vmem_limit_bytes=vmem_limit_bytes),
        cost_estimate=cost,
    )(x2d)
    return out2d.reshape(orig_shape)


# ----------------------------------------------------------------------------
# JAX-side module mirroring the PyTorch class structure.
# ----------------------------------------------------------------------------
class CodeAnalysis:
    """JAX/Pallas counterpart of the abstract PyTorch CodeAnalysis module.

    __init__ defines no learnable parameters (only `name` / `cur_epoch`),
    so there are no weights to initialize.
    """

    def __init__(self, name: str):
        self.name = name
        self.cur_epoch = 0

    def forward(self, code_features, code_labels, *, materialize: bool = False):
        # TODO(synk): base-class forward() raises NotImplementedError; no
        # compute is specified, so the faithful realization of the Dict->Dict
        # contract is the identity.  Default is zero-copy (no HBM traffic, no
        # kernel launch); `materialize=True` copies every feature tensor with
        # ONE fused HBM->HBM DMA pallas_call.
        del code_labels  # unused: base class defines no loss computation.
        if materialize:
            keys = list(code_features.keys())
            if not keys:
                return {}
            copies = dma_copy(*(code_features[k] for k in keys))
            return dict(zip(keys, copies))
        return dict(code_features)

    def check_loss_in_range(self, range_to_check):
        # Host-side scalar predicate: three integer compares do not warrant a
        # kernel launch + blocking device->host sync.
        if range_to_check[0] == range_to_check[1] == -1:
            return True
        return range_to_check[0] <= self.cur_epoch <= range_to_check[1]

    def get_metrics(self, reset: bool = False):
        return {}


if __name__ == "__main__":
    key = jax.random.PRNGKey(0)
    k1, k2, k3, k4, k5 = jax.random.split(key, 5)

    # Small deterministic example inputs: batch=2, seq=8, hidden=128 (one
    # non-lane-aligned hidden=96 entry to exercise the DMA path with odd
    # shapes inside the fused call).
    code_features = {
        "token_embeddings": jax.random.normal(k1, (2, 8, 128), dtype=jnp.float32),
        "ast_embeddings": jax.random.normal(
            k2, (2, 8, 128), dtype=jnp.float32).astype(jnp.bfloat16),
        "graph_embeddings": jax.random.normal(k3, (2, 8, 96), dtype=jnp.float32),
    }
    code_labels = {"labels": jnp.zeros((2, 8), dtype=jnp.int32)}

    model = CodeAnalysis(name="code_analysis_pallas")

    # Default zero-copy identity forward (Dict -> Dict contract, no kernel).
    out = model.forward(code_features, code_labels)
    for k in code_features:
        assert out[k] is code_features[k]

    # Materializing path: ONE fused HBM->HBM DMA pallas_call for all entries.
    out_m = model.forward(code_features, code_labels, materialize=True)
    for v in out_m.values():
        jax.block_until_ready(v)
    for k in code_features:
        assert out_m[k].shape == code_features[k].shape
        assert out_m[k].dtype == code_features[k].dtype
        assert jnp.array_equal(out_m[k], code_features[k])

    # Tiled VMEM-staged path, default generation-aware budget (exercises the
    # >=2-grid-step split for v7x TensorCore sharding).
    med = jax.random.normal(k4, (64, 256), dtype=jnp.float32)
    med_copy = passthrough_copy(med)
    jax.block_until_ready(med_copy)
    assert jnp.array_equal(med_copy, med)

    # Multi-step row tiling (small per-block budget forces rows=352,
    # block_rows=32 -> 11 lane-dense grid steps).
    big = jax.random.normal(k5, (4, 88, 256), dtype=jnp.float32)
    big_copy = passthrough_copy(big, max_block_bytes=32 * 256 * 4)
    jax.block_until_ready(big_copy)
    assert jnp.array_equal(big_copy, big)

    # Column tiling for wide rows (2D grid: block_rows=8, block_cols=512).
    wide = jax.random.normal(k1, (8, 2048), dtype=jnp.float32)
    wide_copy = passthrough_copy(wide, max_block_bytes=16 * 1024)
    jax.block_until_ready(wide_copy)
    assert jnp.array_equal(wide_copy, wide)

    # Non-lane-aligned last dim routes to the direct DMA path (no relayout).
    odd = jax.random.normal(k2, (2, 8, 100), dtype=jnp.float32)
    odd_copy = passthrough_copy(odd)
    jax.block_until_ready(odd_copy)
    assert jnp.array_equal(odd_copy, odd)

    # check_loss_in_range semantics (host-side).
    assert model.check_loss_in_range([-1, -1]) is True
    assert model.check_loss_in_range([0, 5]) is True      # cur_epoch = 0
    assert model.check_loss_in_range([1, 5]) is False
    model.cur_epoch = 3
    assert model.check_loss_in_range([1, 5]) is True

    print("KERNEL_OK")
</pallas_src>

<mosaic_0001>
module attributes {stable_mosaic.version = 11 : i64} {
  func.func @kernel(%arg0: memref<2x8x128xf32, #tpu.memory_space<any>>, %arg1: memref<2x8x128xbf16, #tpu.memory_space<any>>, %arg2: memref<2x8x96xf32, #tpu.memory_space<any>>, %arg3: memref<2x8x128xf32, #tpu.memory_space<any>>, %arg4: memref<2x8x128xbf16, #tpu.memory_space<any>>, %arg5: memref<2x8x96xf32, #tpu.memory_space<any>>, %arg6: memref<3x!tpu.dma_semaphore, #tpu.memory_space<semaphore_mem>>) attributes {dimension_semantics = [], scalar_prefetch = 0 : i64, scratch_operands = 1 : i64, tpu.core_type = #tpu.core_type<tc>} {
    %c0_i32 = arith.constant 0 : i32
    %0 = tpu.memref_slice %arg6[%c0_i32] : memref<3x!tpu.dma_semaphore, #tpu.memory_space<semaphore_mem>> -> memref<1x!tpu.dma_semaphore, #tpu.memory_space<semaphore_mem>>
    %1 = tpu.memref_squeeze %0 : memref<1x!tpu.dma_semaphore, #tpu.memory_space<semaphore_mem>> -> memref<!tpu.dma_semaphore, #tpu.memory_space<semaphore_mem>>
    tpu.enqueue_dma source(%arg0 : memref<2x8x128xf32, #tpu.memory_space<any>>) target(%arg3 : memref<2x8x128xf32, #tpu.memory_space<any>>) target_semaphore(%1 : memref<!tpu.dma_semaphore, #tpu.memory_space<semaphore_mem>>)
    %c1_i32 = arith.constant 1 : i32
    %2 = tpu.memref_slice %arg6[%c1_i32] : memref<3x!tpu.dma_semaphore, #tpu.memory_space<semaphore_mem>> -> memref<1x!tpu.dma_semaphore, #tpu.memory_space<semaphore_mem>>
    %3 = tpu.memref_squeeze %2 : memref<1x!tpu.dma_semaphore, #tpu.memory_space<semaphore_mem>> -> memref<!tpu.dma_semaphore, #tpu.memory_space<semaphore_mem>>
    tpu.enqueue_dma source(%arg1 : memref<2x8x128xbf16, #tpu.memory_space<any>>) target(%arg4 : memref<2x8x128xbf16, #tpu.memory_space<any>>) target_semaphore(%3 : memref<!tpu.dma_semaphore, #tpu.memory_space<semaphore_mem>>)
    %c2_i32 = arith.constant 2 : i32
    %4 = tpu.memref_slice %arg6[%c2_i32] : memref<3x!tpu.dma_semaphore, #tpu.memory_space<semaphore_mem>> -> memref<1x!tpu.dma_semaphore, #tpu.memory_space<semaphore_mem>>
    %5 = tpu.memref_squeeze %4 : memref<1x!tpu.dma_semaphore, #tpu.memory_space<semaphore_mem>> -> memref<!tpu.dma_semaphore, #tpu.memory_space<semaphore_mem>>
    tpu.enqueue_dma source(%arg2 : memref<2x8x96xf32, #tpu.memory_space<any>>) target(%arg5 : memref<2x8x96xf32, #tpu.memory_space<any>>) target_semaphore(%5 : memref<!tpu.dma_semaphore, #tpu.memory_space<semaphore_mem>>)
    %c0_i32_0 = arith.constant 0 : i32
    %6 = tpu.memref_slice %arg6[%c0_i32_0] : memref<3x!tpu.dma_semaphore, #tpu.memory_space<semaphore_mem>> -> memref<1x!tpu.dma_semaphore, #tpu.memory_space<semaphore_mem>>
    %7 = tpu.memref_squeeze %6 : memref<1x!tpu.dma_semaphore, #tpu.memory_space<semaphore_mem>> -> memref<!tpu.dma_semaphore, #tpu.memory_space<semaphore_mem>>
    tpu.wait_dma2 semaphore(%7 : memref<!tpu.dma_semaphore, #tpu.memory_space<semaphore_mem>>) src(%arg0 : memref<2x8x128xf32, #tpu.memory_space<any>>) dst(%arg3 : memref<2x8x128xf32, #tpu.memory_space<any>>)
    %c1_i32_1 = arith.constant 1 : i32
    %8 = tpu.memref_slice %arg6[%c1_i32_1] : memref<3x!tpu.dma_semaphore, #tpu.memory_space<semaphore_mem>> -> memref<1x!tpu.dma_semaphore, #tpu.memory_space<semaphore_mem>>
    %9 = tpu.memref_squeeze %8 : memref<1x!tpu.dma_semaphore, #tpu.memory_space<semaphore_mem>> -> memref<!tpu.dma_semaphore, #tpu.memory_space<semaphore_mem>>
    tpu.wait_dma2 semaphore(%9 : memref<!tpu.dma_semaphore, #tpu.memory_space<semaphore_mem>>) src(%arg1 : memref<2x8x128xbf16, #tpu.memory_space<any>>) dst(%arg4 : memref<2x8x128xbf16, #tpu.memory_space<any>>)
    %c2_i32_2 = arith.constant 2 : i32
    %10 = tpu.memref_slice %arg6[%c2_i32_2] : memref<3x!tpu.dma_semaphore, #tpu.memory_space<semaphore_mem>> -> memref<1x!tpu.dma_semaphore, #tpu.memory_space<semaphore_mem>>
    %11 = tpu.memref_squeeze %10 : memref<1x!tpu.dma_semaphore, #tpu.memory_space<semaphore_mem>> -> memref<!tpu.dma_semaphore, #tpu.memory_space<semaphore_mem>>
    tpu.wait_dma2 semaphore(%11 : memref<!tpu.dma_semaphore, #tpu.memory_space<semaphore_mem>>) src(%arg2 : memref<2x8x96xf32, #tpu.memory_space<any>>) dst(%arg5 : memref<2x8x96xf32, #tpu.memory_space<any>>)
    return
  }
}

</mosaic_0001>

<bundles_post_ra>
// kernel: tpu_custom_call.1
= control target key start
LH: loop header
LB: loop body
LE: loop exit
PB: predicated region body
PF: predicated region fallthrough
CT: control target
= control target key end

     0   :  { %s99_s18 = smov [#allocation2]   ;;  %s100_s19 = smov [#allocation3]   ;;  %s154_s0 = inlined_call_operand.hbm [shape: f32[2,8,128], index: 0, kind: input, shape index: {}]   ;;  %s155_s3 = inlined_call_operand.hbm [shape: f32[2,8,128], index: 3, kind: output, shape index: {0}]   ;;  %s156_s1 = inlined_call_operand.hbm [shape: bf16[2,8,128], index: 1, kind: input, shape index: {}]   ;;  %s157_s4 = inlined_call_operand.hbm [shape: bf16[2,8,128], index: 4, kind: output, shape index: {1}]   ;;  %s158_s2 = inlined_call_operand.hbm [shape: f32[2,8,96], index: 2, kind: input, shape index: {}]   ;;  %s159_s5 = inlined_call_operand.hbm [shape: f32[2,8,96], index: 5, kind: output, shape index: {2}]  }
   0x1   :  { %s101_s20 = smov 0   ;;  %s102_s25 = smov [#allocation2 + $0x1]  }
   0x2   :  { %23 = dma.general %s154_s0, 256, %s155_s3, %s99_s18, %s100_s19, [#allocation4], %s101_s20, 0  }
   0x3   :  { %s103_s26 = smov [#allocation5]   ;;  %s104_s6 = smov [#allocation2 + $0x2]  }
   0x4   :  { %37 = dma.general %s156_s1, 128, %s157_s4, %s102_s25, %s103_s26, [#allocation6], %s101_s20, 0  }
   0x5   :  { %s105_s7 = smov [#allocation7]  }
   0x6   :  { %51 = dma.general %s158_s2, 256, %s159_s5, %s104_s6, %s105_s7, [#allocation8], %s101_s20, 0  }
   0x7   :  { %93 = dma.done.wait [#allocation2], 256 }
   0x8   :  { %94 = vsyncadd [#allocation2], 4294967040 }
   0x9   :  { %95 = dma.done.wait [#allocation2 + $0x1], 128 }
   0xa   :  { %96 = vsyncadd [#allocation2 + $0x1], 4294967168 }
   0xb   :  { %97 = dma.done.wait [#allocation2 + $0x2], 256 }
   0xc   :  { %98 = vsyncadd [#allocation2 + $0x2], 4294967040 }
   0xd   :  { %63 = vsyncmov [#allocation2] }
  0x10   :  { %s64_s0 = vpop.sfrf %63 }
  0x11   :  { %p83_p0 = scmp.ne.s32.totalorder %s64_s0, 0 }
  0x13   :  { %68 = shalt.err (%p83_p0)  }
  0x14   :  { %70 = vsyncmov [#allocation2 + $0x1] }
  0x17   :  { %s71_s1 = vpop.sfrf %70 }
  0x18   :  { %p84_p1 = scmp.ne.s32.totalorder %s71_s1, 0 }
  0x1a   :  { %75 = shalt.err (%p84_p1)  }
  0x1b   :  { %77 = vsyncmov [#allocation2 + $0x2] }
  0x1e   :  { %s78_s3 = vpop.sfrf %77 }
  0x1f   :  { %p85_p2 = scmp.ne.s32.totalorder %s78_s3, 0 }
  0x21   :  { %82 = shalt.err (%p85_p2)  }

</bundles_post_ra>
